<compile_context>
chip_gen: v5e
topology: v5e:2x2
jax: 0.10.0
libtpu: 0.0.40
codegen_flags: <defaults>
</compile_context>

<pallas_src>
import jax
import jax.numpy as jnp
from jax.experimental import pallas as pl
from jax.experimental.pallas import tpu as pltpu

_PAD = 8      # sublane-aligned W padding on each side of the row buffers
_CP = 128     # the 48-channel block1 path is zero-padded to a full lane group


# ---------------------------------------------------------------------------
# Bilinear interpolation matrices (nn.UpsamplingBilinear2d => align_corners)
# ---------------------------------------------------------------------------
def _bilinear_matrix(n_in, n_out):
    """(n_out, n_in) interpolation matrix, align_corners=True. Needs n_out>1."""
    if n_in == 1:
        return jnp.ones((n_out, 1), jnp.float32)
    out_idx = jnp.arange(n_out, dtype=jnp.float32)
    src = out_idx * (n_in - 1) / (n_out - 1)
    i0 = jnp.clip(jnp.floor(src).astype(jnp.int32), 0, n_in - 2)
    frac = src - i0.astype(jnp.float32)
    return ((1.0 - frac)[:, None] * jax.nn.one_hot(i0, n_in, dtype=jnp.float32)
            + frac[:, None] * jax.nn.one_hot(i0 + 1, n_in, dtype=jnp.float32))


def _uh_all(Ha, Ho, TR):
    """(T*(TR+2), Ha) H-interp matrix: per-tile rows incl. zero halo rows."""
    T = Ho // TR
    Uh = _bilinear_matrix(Ha, Ho)                                  # (Ho, Ha)
    zero = jnp.zeros((1, Ha), jnp.float32)
    Uh_pad = jnp.concatenate([zero, Uh, zero], axis=0)             # (Ho+2, Ha)
    return jnp.concatenate(
        [Uh_pad[t * TR:t * TR + TR + 2] for t in range(T)], axis=0)


def _uw_pad8(Wa, Wo):
    """(Wo+16, Wa) W-interp matrix with 8 zero rows on each side (aligned pad)."""
    Uw = _bilinear_matrix(Wa, Wo)                                  # (Wo, Wa)
    zeros8 = jnp.zeros((_PAD, Wa), jnp.float32)
    return jnp.concatenate([zeros8, Uw, zeros8], axis=0)


def _pick_tile_rows(H):
    for tr in (32, 24, 16, 8):
        if H % tr == 0:
            return tr
    raise ValueError(f"High-res feature height {H} must be divisible by 8.")


def _depthwise_dtype():
    """bf16 VPU math / scratch on v6e & newer; f32 elsewhere (no bf16 VALU)."""
    try:
        kind = jax.devices()[0].device_kind.lower()
    except Exception:
        kind = ""
    if any(tag in kind for tag in ("v6", "v7", "tpu7")):
        return jnp.bfloat16
    return jnp.float32


def _vmem_limit_bytes():
    """Generation-aware scoped-VMEM limit (instead of a hardcoded 40 MiB)."""
    cap = 64 * 1024 * 1024
    try:
        cap = int(pltpu.get_tpu_info().vmem_capacity_bytes)
    except Exception:
        pass
    return max(32 * 1024 * 1024, min(3 * cap // 4, 96 * 1024 * 1024))


def _dw3x3_rows(r0, r1, r2, taps, W):
    """3x3 depthwise for ONE output row from three W-padded input rows.

    r0/r1/r2: (W+16, C) rows with data in columns [8, 8+W) and zeros in the
    pad columns.  taps: (9, C), row k = tap (k//3, k%3).  Returns (W, C).
    Accumulation stays in registers; the three column-shift groups are summed
    first so only two shifted slices are needed per output row.
    """
    g0 = r0 * taps[0:1, :] + r1 * taps[3:4, :] + r2 * taps[6:7, :]
    g1 = r0 * taps[1:2, :] + r1 * taps[4:5, :] + r2 * taps[7:8, :]
    g2 = r0 * taps[2:3, :] + r1 * taps[5:6, :] + r2 * taps[8:9, :]
    return (g0[_PAD - 1:_PAD - 1 + W, :]
            + g1[_PAD:_PAD + W, :]
            + g2[_PAD + 1:_PAD + 1 + W, :])


# ---------------------------------------------------------------------------
# Stage 1: H-direction upsample of the ASPP features, one matmul per batch.
# ---------------------------------------------------------------------------
def _aspp_h_upsample_kernel(uh_ref, aspp_ref, o_ref):
    # uh_ref: (T*(TR+2), Ha)   aspp_ref: (1, Ha, Wa*C)   o_ref: (1, T*(TR+2), Wa*C)
    o_ref[0] = jnp.dot(uh_ref[...], aspp_ref[0],
                       preferred_element_type=jnp.float32).astype(o_ref.dtype)


def _aspp_h_upsample(aspp_flat, uh_all, vmem_limit):
    B, Ha, WaC = aspp_flat.shape
    M = uh_all.shape[0]
    return pl.pallas_call(
        _aspp_h_upsample_kernel,
        out_shape=jax.ShapeDtypeStruct((B, M, WaC), jnp.bfloat16),
        grid_spec=pltpu.PrefetchScalarGridSpec(
            num_scalar_prefetch=0,
            grid=(B,),
            in_specs=[
                pl.BlockSpec((M, Ha), lambda b: (0, 0)),
                pl.BlockSpec((1, Ha, WaC), lambda b: (b, 0, 0)),
            ],
            out_specs=pl.BlockSpec((1, M, WaC), lambda b: (b, 0, 0)),
        ),
        compiler_params=pltpu.CompilerParams(
            dimension_semantics=("parallel",),
            vmem_limit_bytes=vmem_limit),
    )(uh_all, aspp_flat)


# ---------------------------------------------------------------------------
# Stage 2: fused W-upsample + block1 + concat + block2 (sepconv + BN + ReLU)
# ---------------------------------------------------------------------------
def _fused_block12_kernel(t_ref, uwp_ref, hr_blk_ref, hr_any_ref,
                          w1_ref, s1_ref, b1_ref,
                          dwa_ref, dwh_ref, pwa_ref, pwh_ref, s2_ref, b2_ref,
                          o_ref,
                          up_ref, h1pad_ref, halo_ref, sem):
    TR = o_ref.shape[1]
    WP = o_ref.shape[2]                      # W + 16 (W-padded output row)
    W = WP - 2 * _PAD
    Co = o_ref.shape[3]
    R2 = t_ref.shape[2]                      # TR + 2 (zero H-halo rows included)
    Chr = hr_blk_ref.shape[3]
    CP = w1_ref.shape[1]                     # padded block1 channels (128)
    H = hr_any_ref.shape[1]
    cdt = up_ref.dtype                       # depthwise compute / scratch dtype

    b = pl.program_id(0)
    t = pl.program_id(1)
    r0 = t * TR

    # -- halo-row DMAs for the high-res encoder feature (clamped row index,
    #    out-of-image rows zeroed after block1) ------------------------------
    top = jnp.maximum(r0 - 1, 0)
    bot = jnp.minimum(r0 + TR, H - 1)
    cp_top = pltpu.make_async_copy(hr_any_ref.at[b, pl.ds(top, 1)],
                                   halo_ref.at[pl.ds(0, 1)], sem.at[0])
    cp_bot = pltpu.make_async_copy(hr_any_ref.at[b, pl.ds(bot, 1)],
                                   halo_ref.at[pl.ds(1, 1)], sem.at[1])
    cp_top.start()
    cp_bot.start()

    # -- ASPP path: W upsample while the halo DMAs are in flight.  uwp has 8
    #    zero rows on each side, so every up_ref row is stored W-padded with
    #    an aligned (offset-0) store; the t-tile's H halo rows are zero, so
    #    block2's zero padding in H is free as well. --------------------------
    uwp = uwp_ref[...]                                       # (W+16, Wa) bf16
    for r in range(R2):
        up_ref[r] = jnp.dot(uwp, t_ref[0, 0, r],
                            preferred_element_type=jnp.float32).astype(cdt)

    # -- block1 (1x1 conv + BN + ReLU) on the rows already in VMEM -----------
    w1 = w1_ref[...]                                         # (Chr, 128) bf16
    s1 = s1_ref[...]
    b1 = b1_ref[...]

    def block1(x2d):                                         # (n, Chr) -> (n, 128)
        y = jnp.dot(x2d.astype(jnp.bfloat16), w1,
                    preferred_element_type=jnp.float32)
        return jnp.maximum(y * s1 + b1, 0.0)

    # zero the W-pad columns once (aligned 8-wide slabs), then aligned stores
    h1pad_ref[:, 0:_PAD, :] = jnp.zeros((R2, _PAD, CP), cdt)
    h1pad_ref[:, W + _PAD:, :] = jnp.zeros((R2, _PAD, CP), cdt)
    h1_main = block1(hr_blk_ref[0].reshape(TR * W, Chr)).reshape(TR, W, CP)
    h1pad_ref[1:TR + 1, _PAD:_PAD + W, :] = h1_main.astype(cdt)

    # -- halo rows: wait, run block1, zero rows that fall outside the image --
    cp_top.wait()
    cp_bot.wait()
    h1_halo = block1(halo_ref[...].reshape(2 * W, Chr)).reshape(2, W, CP)
    tv = jnp.where(r0 > 0, 1.0, 0.0)
    bv = jnp.where(r0 + TR < H, 1.0, 0.0)
    h1pad_ref[0:1, _PAD:_PAD + W, :] = (h1_halo[0:1] * tv).astype(cdt)
    h1pad_ref[TR + 1:TR + 2, _PAD:_PAD + W, :] = (h1_halo[1:2] * bv).astype(cdt)

    # -- per output row: depthwise with a register accumulator (one store per
    #    row), split pointwise matmuls over the concat groups, BN, ReLU ------
    dwa = dwa_ref[...]
    dwh = dwh_ref[...]
    pwa = pwa_ref[...]
    pwh = pwh_ref[...]
    s2 = s2_ref[...]
    b2 = b2_ref[...]

    def row_body(r, carry):
        acc_a = _dw3x3_rows(up_ref[r], up_ref[r + 1], up_ref[r + 2], dwa, W)
        acc_h = _dw3x3_rows(h1pad_ref[r], h1pad_ref[r + 1], h1pad_ref[r + 2],
                            dwh, W)
        y = jnp.dot(acc_a.astype(jnp.bfloat16), pwa,
                    preferred_element_type=jnp.float32)
        y = y + jnp.dot(acc_h.astype(jnp.bfloat16), pwh,
                        preferred_element_type=jnp.float32)
        y = jnp.maximum(y * s2 + b2, 0.0)
        o_ref[0, r, _PAD:_PAD + W, :] = y.astype(o_ref.dtype)
        return carry

    jax.lax.fori_loop(0, TR, row_body, 0, unroll=True)

    # zero the W-pad columns of the output tile (consumed by block3's stencil)
    o_ref[0, :, 0:_PAD, :] = jnp.zeros((TR, _PAD, Co), o_ref.dtype)
    o_ref[0, :, W + _PAD:, :] = jnp.zeros((TR, _PAD, Co), o_ref.dtype)


def _fused_block1_block2(t_tiles, hr, uwp8, w1p, bn1, dwa, dwhp, pwa, pwhp,
                         bn2, tile_rows, act_dtype, cdt, vmem_limit):
    B, T, R2, Wa, Ca = t_tiles.shape
    _, H, W, Chr = hr.shape
    Co = pwa.shape[1]
    CP = w1p.shape[1]
    TR = tile_rows
    WP = W + 2 * _PAD
    s1, b1 = bn1
    s2, b2 = bn2
    return pl.pallas_call(
        _fused_block12_kernel,
        out_shape=jax.ShapeDtypeStruct((B, H, WP, Co), act_dtype),
        grid_spec=pltpu.PrefetchScalarGridSpec(
            num_scalar_prefetch=0,
            grid=(B, T),
            in_specs=[
                pl.BlockSpec((1, 1, R2, Wa, Ca), lambda b, t: (b, t, 0, 0, 0)),
                pl.BlockSpec((WP, Wa), lambda b, t: (0, 0)),
                pl.BlockSpec((1, TR, W, Chr), lambda b, t: (b, t, 0, 0)),
                pl.BlockSpec(memory_space=pl.ANY),        # hr again, halo DMA
                pl.BlockSpec((Chr, CP), lambda b, t: (0, 0)),
                pl.BlockSpec((1, CP), lambda b, t: (0, 0)),
                pl.BlockSpec((1, CP), lambda b, t: (0, 0)),
                pl.BlockSpec((9, Ca), lambda b, t: (0, 0)),
                pl.BlockSpec((9, CP), lambda b, t: (0, 0)),
                pl.BlockSpec((Ca, Co), lambda b, t: (0, 0)),
                pl.BlockSpec((CP, Co), lambda b, t: (0, 0)),
                pl.BlockSpec((1, Co), lambda b, t: (0, 0)),
                pl.BlockSpec((1, Co), lambda b, t: (0, 0)),
            ],
            out_specs=pl.BlockSpec((1, TR, WP, Co), lambda b, t: (b, t, 0, 0)),
            scratch_shapes=[
                pltpu.VMEM((R2, WP, Ca), cdt),     # W-padded upsampled ASPP rows
                pltpu.VMEM((R2, WP, CP), cdt),     # W-padded block1 output rows
                pltpu.VMEM((2, W, Chr), hr.dtype),  # hr halo rows
                pltpu.SemaphoreType.DMA((2,)),
            ]),
        compiler_params=pltpu.CompilerParams(
            dimension_semantics=("parallel", "parallel"),
            vmem_limit_bytes=vmem_limit),
    )(t_tiles, uwp8, hr, hr, w1p, s1, b1, dwa, dwhp, pwa, pwhp, s2, b2)


# ---------------------------------------------------------------------------
# Stage 3: block3 = SeparableConv2d(3x3, pad=1) + BN + ReLU, row-tiled
# ---------------------------------------------------------------------------
def _sepconv_block3_kernel(x_blk_ref, x_any_ref, dw_ref, pw_ref, s_ref, b_ref,
                           o_ref, halo_ref, sem):
    TR = o_ref.shape[1]
    W = o_ref.shape[2]
    H = x_any_ref.shape[1]
    cdt = dw_ref.dtype

    b = pl.program_id(0)
    t = pl.program_id(1)
    r0 = t * TR
    top = jnp.maximum(r0 - 1, 0)
    bot = jnp.minimum(r0 + TR, H - 1)
    cp_top = pltpu.make_async_copy(x_any_ref.at[b, pl.ds(top, 1)],
                                   halo_ref.at[pl.ds(0, 1)], sem.at[0])
    cp_bot = pltpu.make_async_copy(x_any_ref.at[b, pl.ds(bot, 1)],
                                   halo_ref.at[pl.ds(1, 1)], sem.at[1])
    cp_top.start()
    cp_bot.start()

    dw = dw_ref[...]
    pw = pw_ref[...]
    sc = s_ref[...]
    sh = b_ref[...]

    def finish_row(r, acc):
        y = jnp.dot(acc.astype(jnp.bfloat16), pw,
                    preferred_element_type=jnp.float32)
        o_ref[0, r] = jnp.maximum(y * sc + sh, 0.0).astype(o_ref.dtype)

    # interior rows (no halo rows needed) overlap with the halo-row DMAs
    def interior(r, carry):
        acc = _dw3x3_rows(x_blk_ref[0, r - 1].astype(cdt),
                          x_blk_ref[0, r].astype(cdt),
                          x_blk_ref[0, r + 1].astype(cdt), dw, W)
        finish_row(r, acc)
        return carry

    jax.lax.fori_loop(1, TR - 1, interior, 0, unroll=True)

    # edge rows: fold the (flag-masked) halo rows in after the DMAs complete
    cp_top.wait()
    cp_bot.wait()
    tv = jnp.where(r0 > 0, 1.0, 0.0).astype(cdt)
    bv = jnp.where(r0 + TR < H, 1.0, 0.0).astype(cdt)
    row_top = halo_ref[0].astype(cdt) * tv
    row_bot = halo_ref[1].astype(cdt) * bv

    finish_row(0, _dw3x3_rows(row_top,
                              x_blk_ref[0, 0].astype(cdt),
                              x_blk_ref[0, 1].astype(cdt), dw, W))
    finish_row(TR - 1, _dw3x3_rows(x_blk_ref[0, TR - 2].astype(cdt),
                                   x_blk_ref[0, TR - 1].astype(cdt),
                                   row_bot, dw, W))


def _sepconv_block3(x_pad, dw, pw, bn, tile_rows, out_dtype, cdt, vmem_limit):
    B, H, WP, C = x_pad.shape
    W = WP - 2 * _PAD
    Co = pw.shape[1]
    TR = tile_rows
    T = H // TR
    s, b = bn
    return pl.pallas_call(
        _sepconv_block3_kernel,
        out_shape=jax.ShapeDtypeStruct((B, H, W, Co), out_dtype),
        grid_spec=pltpu.PrefetchScalarGridSpec(
            num_scalar_prefetch=0,
            grid=(B, T),
            in_specs=[
                pl.BlockSpec((1, TR, WP, C), lambda b, t: (b, t, 0, 0)),
                pl.BlockSpec(memory_space=pl.ANY),        # same array, halo DMA
                pl.BlockSpec((9, C), lambda b, t: (0, 0)),
                pl.BlockSpec((C, Co), lambda b, t: (0, 0)),
                pl.BlockSpec((1, Co), lambda b, t: (0, 0)),
                pl.BlockSpec((1, Co), lambda b, t: (0, 0)),
            ],
            out_specs=pl.BlockSpec((1, TR, W, Co), lambda b, t: (b, t, 0, 0)),
            scratch_shapes=[
                pltpu.VMEM((2, WP, C), x_pad.dtype),       # halo rows (W-padded)
                pltpu.SemaphoreType.DMA((2,)),
            ]),
        compiler_params=pltpu.CompilerParams(
            dimension_semantics=("parallel", "parallel"),
            vmem_limit_bytes=vmem_limit),
    )(x_pad, x_pad, dw, pw, s, b)


# ---------------------------------------------------------------------------
# Parameters (deterministic synthetic; BN folded to inference scale/shift)
# ---------------------------------------------------------------------------
def init_params(key, encoder_channels, out_channels):
    highres_in = encoder_channels[-4]
    highres_out = 48                      # hardcoded in the PyTorch module
    c_cat = out_channels + highres_out
    keys = iter(jax.random.split(key, 32))
    eps = 1e-5

    def nrm(shape, scale=0.05):
        return scale * jax.random.normal(next(keys), shape, jnp.float32)

    def bn(c):
        gamma = 1.0 + 0.1 * jax.random.normal(next(keys), (c,), jnp.float32)
        beta = nrm((c,), 0.1)
        mean = nrm((c,), 0.1)
        var = jnp.abs(jax.random.normal(next(keys), (c,), jnp.float32)) + 0.5
        scale = gamma * jax.lax.rsqrt(var + eps)
        shift = beta - mean * scale
        return scale, shift

    p = {}
    p["w1"] = nrm((highres_in, highres_out))       # 1x1 conv weight (Cin, Cout)
    p["bn1"] = bn(highres_out)
    p["dw2"] = nrm((3, 3, c_cat))                  # depthwise 3x3 (kh, kw, C)
    p["pw2"] = nrm((c_cat, out_channels))          # pointwise (Cin, Cout)
    p["bn2"] = bn(out_channels)
    p["dw3"] = nrm((3, 3, out_channels))
    p["pw3"] = nrm((out_channels, out_channels))
    p["bn3"] = bn(out_channels)
    return p


# ---------------------------------------------------------------------------
# Decoder forward (NCHW in / NCHW out, like the PyTorch module)
# ---------------------------------------------------------------------------
def deeplabv3plus_decoder(params, aspp_features, *features_resnet,
                          output_stride=16, tile_rows=None):
    if output_stride not in (8, 16):
        raise ValueError("Output stride should be 8 or 16.")
    scale = 2 if output_stride == 8 else 4

    B, Ca, Ha, Wa = aspp_features.shape
    hr_nchw = features_resnet[-4]
    _, Chr, H, W = hr_nchw.shape
    assert H == Ha * scale and W == Wa * scale, (H, W, Ha, Wa, scale)

    TR = _pick_tile_rows(H) if tile_rows is None else tile_rows
    assert H % TR == 0 and TR % 8 == 0, (H, TR)
    T = H // TR
    R2 = TR + 2

    cdt = _depthwise_dtype()                # bf16 on v6e/v7x, f32 otherwise
    act_dtype = jnp.bfloat16                # block2 -> block3 HBM activation
    vmem_limit = _vmem_limit_bytes()

    # Boundary layout conversion (NCHW -> NHWC) + bf16 cast of the two large
    # HBM inputs (halves HBM traffic; all MXU matmuls accumulate in f32).
    aspp = jnp.transpose(aspp_features, (0, 2, 3, 1)).astype(jnp.bfloat16)
    hr = jnp.transpose(hr_nchw, (0, 2, 3, 1)).astype(jnp.bfloat16)

    # Interpolation matrices (the zero rows provide block2's spatial padding).
    uh_all = _uh_all(Ha, H, TR).astype(jnp.bfloat16)        # (T*(TR+2), Ha)
    uwp8 = _uw_pad8(Wa, W).astype(jnp.bfloat16)             # (W+16, Wa)

    # Stage 1: H-direction upsample, one lane-dense matmul per batch element.
    aspp_flat = aspp.reshape(B, Ha, Wa * Ca)                # free HBM reshape
    t_all = _aspp_h_upsample(aspp_flat, uh_all, vmem_limit)  # (B, T*R2, Wa*Ca)
    t_tiles = t_all.reshape(B, T, R2, Wa, Ca)               # free HBM reshape

    # Weight prep: split the concat channel groups, zero-pad the 48-channel
    # block1 path to 128 lanes (padded channels stay exactly zero), cast MXU
    # operands to bf16 and the depthwise taps to the VPU compute dtype.
    Co = params["pw2"].shape[1]
    C48 = params["w1"].shape[1]
    CP = _CP
    assert C48 <= CP
    w1p = jnp.zeros((Chr, CP), jnp.float32).at[:, :C48].set(
        params["w1"]).astype(jnp.bfloat16)
    s1, b1 = params["bn1"]
    s1p = jnp.zeros((1, CP), jnp.float32).at[0, :C48].set(s1)
    b1p = jnp.zeros((1, CP), jnp.float32).at[0, :C48].set(b1)

    dw2 = params["dw2"].reshape(9, -1)
    dwa = dw2[:, :Ca].astype(cdt)
    dwhp = jnp.zeros((9, CP), jnp.float32).at[:, :C48].set(
        dw2[:, Ca:]).astype(cdt)
    pwa = params["pw2"][:Ca].astype(jnp.bfloat16)
    pwhp = jnp.zeros((CP, Co), jnp.float32).at[:C48].set(
        params["pw2"][Ca:]).astype(jnp.bfloat16)
    s2, b2 = [v.reshape(1, -1) for v in params["bn2"]]

    dw3 = params["dw3"].reshape(9, -1).astype(cdt)
    pw3 = params["pw3"].astype(jnp.bfloat16)
    s3, b3 = [v.reshape(1, -1) for v in params["bn3"]]

    # Stage 2: fused W-upsample + block1 + concat + block2.  The output tile is
    # stored W-padded (zero columns) so block3 needs no in-kernel pad copy.
    f_pad = _fused_block1_block2(t_tiles, hr, uwp8, w1p, (s1p, b1p),
                                 dwa, dwhp, pwa, pwhp, (s2, b2),
                                 tile_rows=TR, act_dtype=act_dtype, cdt=cdt,
                                 vmem_limit=vmem_limit)

    # Stage 3: block3.
    g = _sepconv_block3(f_pad, dw3, pw3, (s3, b3), tile_rows=TR,
                        out_dtype=aspp_features.dtype, cdt=cdt,
                        vmem_limit=vmem_limit)

    return jnp.transpose(g, (0, 3, 1, 2))                   # back to NCHW


# ---------------------------------------------------------------------------
# Pure-JAX (XLA) reference for a numerical sanity check
# ---------------------------------------------------------------------------
def _reference_decoder(params, aspp, *feats, output_stride=16):
    scale = 2 if output_stride == 8 else 4
    B, Ca, Ha, Wa = aspp.shape
    Uh = _bilinear_matrix(Ha, Ha * scale)
    Uw = _bilinear_matrix(Wa, Wa * scale)
    x = jnp.einsum("rh,bchw->bcrw", Uh, aspp)
    x = jnp.einsum("pw,bcrw->bcrp", Uw, x)                 # (B, Ca, H, W)
    hr = feats[-4]
    s1, b1 = params["bn1"]
    h1 = jnp.einsum("bchw,cd->bdhw", hr, params["w1"])
    h1 = jnp.maximum(h1 * s1[None, :, None, None] + b1[None, :, None, None], 0.0)
    cat = jnp.concatenate([x, h1], axis=1)

    def sep(z, dw, pw, bn):
        s, b = bn
        zp = jnp.pad(z, ((0, 0), (0, 0), (1, 1), (1, 1)))
        acc = jnp.zeros_like(z)
        for i in range(3):
            for j in range(3):
                acc = acc + zp[:, :, i:i + z.shape[2], j:j + z.shape[3]] \
                    * dw[i, j][None, :, None, None]
        y = jnp.einsum("bchw,cd->bdhw", acc, pw)
        return jnp.maximum(y * s[None, :, None, None] + b[None, :, None, None], 0.0)

    f = sep(cat, params["dw2"], params["pw2"], params["bn2"])
    return sep(f, params["dw3"], params["pw3"], params["bn3"])


if __name__ == "__main__":
    key = jax.random.PRNGKey(0)
    B = 2
    out_channels = 32                       # small stand-in for the default 256
    output_stride = 16                      # -> scale_factor 4
    encoder_channels = (3, 8, 16, 24, 40)   # encoder_channels[-4] == 8

    k_aspp, k_params, k0, k1, k2, k3 = jax.random.split(key, 6)

    # ASPP features at stride 16 of a notional 64x64 input -> 4x4 spatial
    aspp = jax.random.normal(k_aspp, (B, out_channels, 4, 4), jnp.float32)
    # features_resnet: [-4] is the stride-4 high-res feature (16x16)
    feats = [
        jax.random.normal(k0, (B, encoder_channels[-4], 16, 16), jnp.float32),
        jax.random.normal(k1, (B, encoder_channels[-3], 8, 8), jnp.float32),
        jax.random.normal(k2, (B, encoder_channels[-2], 4, 4), jnp.float32),
        jax.random.normal(k3, (B, encoder_channels[-1], 4, 4), jnp.float32),
    ]
    params = init_params(k_params, encoder_channels, out_channels)

    out = deeplabv3plus_decoder(params, aspp, *feats,
                                output_stride=output_stride, tile_rows=8)
    out = jax.block_until_ready(out)
    assert out.shape == (B, out_channels, 16, 16), out.shape
    assert bool(jnp.all(jnp.isfinite(out)))

    ref = _reference_decoder(params, aspp, *feats, output_stride=output_stride)
    max_err = float(jnp.max(jnp.abs(out - ref)))
    assert max_err < 5e-2, max_err          # bf16 MXU operands, f32 accumulate
    print("KERNEL_OK")
</pallas_src>

<mosaic_0001>
module attributes {stable_mosaic.version = 11 : i64} {
  func.func @_aspp_h_upsample_kernel(%arg0: i32, %arg1: memref<20x4xbf16, #tpu.memory_space<vmem>>, %arg2: memref<1x4x128xbf16, #tpu.memory_space<vmem>>, %arg3: memref<1x20x128xbf16, #tpu.memory_space<vmem>>) attributes {dimension_semantics = [#tpu.dimension_semantics<parallel>], iteration_bounds = array<i64: 2>, scalar_prefetch = 0 : i64, scratch_operands = 0 : i64, tpu.core_type = #tpu.core_type<tc>, window_params = [{pipeline_mode = #tpu.pipeline_mode<synchronous>, transform_indices = @transform_0, window_bounds = array<i64: 20, 4>}, {transform_indices = @transform_1, window_bounds = array<i64: 1, 4, 128>}, {transform_indices = @transform_2, window_bounds = array<i64: 1, 20, 128>}]} {
    %c0 = arith.constant 0 : index
    %c0_0 = arith.constant 0 : index
    %0 = vector.load %arg1[%c0, %c0_0] : memref<20x4xbf16, #tpu.memory_space<vmem>>, vector<20x4xbf16>
    %c0_1 = arith.constant 0 : index
    %c0_2 = arith.constant 0 : index
    %c0_3 = arith.constant 0 : index
    %1 = vector.load %arg2[%c0_1, %c0_2, %c0_3] : memref<1x4x128xbf16, #tpu.memory_space<vmem>>, vector<1x4x128xbf16>
    %2 = vector.shape_cast %1 : vector<1x4x128xbf16> to vector<4x128xbf16>
    %cst = arith.constant dense<0.000000e+00> : vector<20x128xf32>
    %3 = tpu.matmul %0, %2, %cst {dimension_numbers = #tpu.dot_dimension_numbers<[1], [0], [0], [1], [0, 0, 1, 1], [], []>} : vector<20x4xbf16>, vector<4x128xbf16>, vector<20x128xf32> -> vector<20x128xf32>
    %4 = arith.truncf %3 : vector<20x128xf32> to vector<20x128xbf16>
    %c0_4 = arith.constant 0 : index
    %c0_5 = arith.constant 0 : index
    %c0_6 = arith.constant 0 : index
    %5 = vector.load %arg3[%c0_4, %c0_5, %c0_6] : memref<1x20x128xbf16, #tpu.memory_space<vmem>>, vector<1x20x128xbf16>
    %6 = vector.shape_cast %5 : vector<1x20x128xbf16> to vector<20x128xbf16>
    %7 = vector.shape_cast %4 : vector<20x128xbf16> to vector<1x20x128xbf16>
    tpu.vector_store %arg3[%c0_4, %c0_5, %c0_6], %7 {strides = array<i32>} : memref<1x20x128xbf16, #tpu.memory_space<vmem>>, vector<1x20x128xbf16>,
    return
  }
  func.func @transform_0(%arg0: i32) -> (i32, i32) {
    %c0_i32 = arith.constant 0 : i32
    %c0_i32_0 = arith.constant 0 : i32
    %c0_i32_1 = arith.constant 0 : i32
    return %c0_i32, %c0_i32_0 : i32, i32
  }
  func.func @transform_1(%arg0: i32) -> (i32, i32, i32) {
    %c0_i32 = arith.constant 0 : i32
    %c0_i32_0 = arith.constant 0 : i32
    %c0_i32_1 = arith.constant 0 : i32
    return %arg0, %c0_i32, %c0_i32_0 : i32, i32, i32
  }
  func.func @transform_2(%arg0: i32) -> (i32, i32, i32) {
    %c0_i32 = arith.constant 0 : i32
    %c0_i32_0 = arith.constant 0 : i32
    %c0_i32_1 = arith.constant 0 : i32
    return %arg0, %c0_i32, %c0_i32_0 : i32, i32, i32
  }
}

</mosaic_0001>

<bundles_post_ra>
// kernel: tpu_custom_call.1
= control target key start
LH: loop header
LB: loop body
LE: loop exit
PB: predicated region body
PF: predicated region fallthrough
CT: control target
= control target key end

     0   :  { %s298_s9 = smov 0   ;;  %s321_s0 = inlined_call_operand.vmem [shape: bf16[20,4], index: 0, kind: input, shape index: {}]   ;;  %s322_s1 = inlined_call_operand.vmem [shape: bf16[2,4,128], index: 1, kind: input, shape index: {}]   ;;  %s323_s2 = inlined_call_operand.vmem [shape: bf16[2,20,128], index: 2, kind: output, shape index: {}]  }
   0x1 LB: > { %s244_s10 = sadd.s32 4294967295, %s281_s9   ;;  %p248_p0 = scmp.ge.s32.totalorder %s281_s9, 1  ;;  %s281_s9 = sphi %s298_s9, %s12_s9  }
   0x2   : > { %p111_p1 = scmp.lt.s32.totalorder %s281_s9, 3 }
   0x4   : > { %p112_p2 = pnand %p248_p0, %p111_p1 }
   0x5   : > { %p132_p3 = scmp.lt.s32.totalorder (!%p112_p2), %s244_s10, 1 }
   0x6   : > { %115 = sbr.rel (%p112_p2) target bundleno = 156 (0x9c), region = 28 }
   0xb   : > { %v144_v0 = vld [vmem:[%s321_s0 + $0x8] sm:$0x3]  ;;  %s325_s10 = smov (!%p132_p3, %s244_s10), 1  ;;  %vm161_vm0 = vcmask 1041408   ;;  %v259_v4 = vld [vmem:[%s321_s0] sm:$0xff]  ;;  %vm154_vm1 = vcmask 31744  }
   0xc   : > { %v151_v1 = vunpack.c.l.b16 %v144_v0  ;;  %s249_s13 = sshll.u32 %s325_s10, 1  ;;  %s266_s19 = smul.u32 12, %s325_s10 }
   0xd   : > { %s135_s16 = scalar_lea.vmem %s322_s1, %s249_s13 }
   0xe   : > { %v145_v2 = vld [vmem:[%s135_s16] sm:$0x3]  ;;  %v153_v5 = vpack.c.b16 %v151_v1, %v151_v1  ;;  %s140_s22 = scalar_lea.vmem %s323_s2, %s266_s19 }
   0xf   : > { %v163_v3 = vsel %vm161_vm0, %v145_v2, 0 }
  0x10   : > { %172 = vmatpush.bf16.msra.mxu0 %v163_v3  ;;  %265 = vmatpush.bf16.msra.mxu1 %v163_v3 }
  0x13   : > { %255 = vmatmul.msk.bf16.vlgmr.msra.gmra.mxu0 %vm154_vm1, %v259_v4  ;;  %256 = vmatmul.msk.bf16.vlgmr.msra.gmra.mxu1 %vm154_vm1, %v153_v5 }
  0x90   : > { %v174_v6 = vpop.f32.mrf.mxu0  ;;  %v179_v7 = vpop.f32.mrf.mxu1 }
  0x91   : > { %v185_v8 = vpack.c.bf16 %v179_v7, %v179_v7 }
  0x93   : > { %188 = vst [vmem:[%s140_s22 + $0x8] sm:$0x3] %v185_v8 }
  0x98   : > { %v176_v9 = vpop.f32.mrf.mxu0  ;;  %v181_v10 = vpop.f32.mrf.mxu1 }
  0x99   : > { %v263_v11 = vpack.c.bf16 %v176_v9, %v174_v6 }
  0x9b   : > { %264 = vst [vmem:[%s140_s22] sm:$0xff] %v263_v11  }
  0x9c PF: > { %s12_s9 = sadd.s32 1, %s281_s9  }
  0x9d   : > { %p9_p4 = scmp.ge.s32.totalorder %s12_s9, 4  }
  0x9f   :  { %11 = sbr.rel (!%p9_p4) target bundleno = 1 (0x1), region = 58 }

</bundles_post_ra>
